<compile_context>
chip_gen: v7x
topology: tpu7x:2x2x1
jax: 0.10.0
libtpu: 0.0.40
codegen_flags: <defaults>
</compile_context>

<pallas_src>
import numpy as np

import jax
import jax.numpy as jnp
from jax import lax
from jax.experimental import pallas as pl
from jax.experimental.pallas import tpu as pltpu

BN_EPS = 1e-5   # PyTorch BatchNorm1d default
LANE = 128


def _round_up(x, m):
    return ((x + m - 1) // m) * m


# ----------------------------------------------------------------------------
# Fused kernel factory.
#   refs = (x_cat, w_1, b_1, ..., w_L, b_L, out)
# The embedding matrix is already folded into w_1 (K padded to 128); hidden
# BatchNorms are folded into the following (w, b).  Each hidden step is
# Linear -> ReLU, the last step is a plain Linear.
# ----------------------------------------------------------------------------
def _make_kernel(row_offsets, num_linear, compute_dtype):
    def kernel(*refs):
        xcat_ref = refs[0]
        o_ref = refs[-1]
        lin_refs = refs[1:-1]

        xc = xcat_ref[...]                               # (tb, C) int32
        tb = xc.shape[0]
        k0 = lin_refs[0].shape[0]                        # padded one-hot width (128)

        # ---- one-hot over the concatenated (padded) vocabulary -------------
        # columns have disjoint offset ranges, so OR-combining is exact
        iota = lax.broadcasted_iota(jnp.int32, (tb, k0), 1)
        hit = iota == (xc[:, 0:1] + row_offsets[0])
        for c in range(1, len(row_offsets)):             # static unroll (6 cols)
            hit = jnp.logical_or(hit, iota == (xc[:, c:c + 1] + row_offsets[c]))
        h = hit.astype(compute_dtype)                    # single convert

        # ---- MLP: (Linear -> ReLU) * (L-1), then output Linear --------------
        for li in range(num_linear):
            w_ref = lin_refs[2 * li]
            b_ref = lin_refs[2 * li + 1]
            h = jnp.dot(h.astype(compute_dtype), w_ref[...],
                        preferred_element_type=jnp.float32) + b_ref[...]
            if li < num_linear - 1:
                h = jnp.maximum(h, 0.0)                  # ReLU (BN folded into next W)
        o_ref[...] = h.astype(o_ref.dtype)
    return kernel


# ----------------------------------------------------------------------------
# Parameter preparation (pure JAX, runs once):
#  * build the block-diagonal embedding matrix,
#  * fold each eval-mode BN (scale s = g*rsqrt(v+eps), shift t = beta - m*s)
#    into the following Linear:  w' = s^T * w,  b' = t @ w + b,
#  * fold the embedding matmul into the first Linear:  W1' = W_emb @ W1,
#  * pad: first K dim to 128, every layer's output width to a multiple of 128
#    (and the next layer's K rows to match) — exact under ReLU,
#  * optionally cast matmul operands to bf16 (biases stay f32).
# ----------------------------------------------------------------------------
def prepare_fused_params(embedding_size, emb_tables, linears, bns, *, use_bf16=False):
    compute_dtype = jnp.bfloat16 if use_bf16 else jnp.float32
    cards = [ni for ni, _ in embedding_size]
    dims = [nf for _, nf in embedding_size]
    total_card = int(np.sum(cards))
    d_in = int(np.sum(dims))
    row_offsets = tuple(int(x) for x in np.cumsum([0] + cards[:-1]))
    col_offsets = [int(x) for x in np.cumsum([0] + dims[:-1])]

    w_emb = jnp.zeros((total_card, d_in), jnp.float32)
    for c, tbl in enumerate(emb_tables):
        w_emb = w_emb.at[row_offsets[c]:row_offsets[c] + cards[c],
                         col_offsets[c]:col_offsets[c] + dims[c]].set(
                             tbl.astype(jnp.float32))

    # ---- fold eval-mode BN into the following Linear -------------------------
    folded = []
    pend = None                                          # (scale, shift) from previous BN
    for li, (w, b) in enumerate(linears):
        w = w.astype(jnp.float32)
        b = jnp.reshape(b, (1, -1)).astype(jnp.float32)
        if pend is not None:
            s, t = pend
            b = t @ w + b                                # uses the un-scaled w
            w = s.reshape(-1, 1) * w
        if li < len(bns):                                # hidden layer: fold its BN forward
            g, be, m, v = (jnp.reshape(a, (1, -1)).astype(jnp.float32) for a in bns[li])
            s = g * lax.rsqrt(v + BN_EPS)
            t = be - m * s
            pend = (s, t)
        else:
            pend = None
        folded.append([w, b])

    # ---- fold the embedding matmul into the first Linear ---------------------
    #   onehot @ (W_emb @ W1) + b1  ==  (onehot @ W_emb) @ W1 + b1
    folded[0][0] = w_emb @ folded[0][0]                  # (total_card, H1)

    # ---- lane-align everything ------------------------------------------------
    k0 = _round_up(total_card, LANE)
    folded[0][0] = jnp.pad(folded[0][0], ((0, k0 - total_card), (0, 0)))

    out_size = folded[-1][0].shape[1]
    for li in range(len(folded)):
        w, b = folded[li]
        n = w.shape[1]
        n_pad = _round_up(n, LANE)
        if n_pad != n:
            folded[li][0] = jnp.pad(w, ((0, 0), (0, n_pad - n)))
            folded[li][1] = jnp.pad(b, ((0, 0), (0, n_pad - n)))
        if li + 1 < len(folded):                         # match next layer's K rows
            w_next, _ = folded[li + 1]
            k_next = w_next.shape[0]
            if n_pad != k_next:
                folded[li + 1][0] = jnp.pad(w_next, ((0, n_pad - k_next), (0, 0)))
    out_pad = folded[-1][0].shape[1]

    lin_args = []
    for w, b in folded:
        lin_args.append(w.astype(compute_dtype))         # matmul operand (maybe bf16)
        lin_args.append(b)                               # bias stays f32

    return dict(
        lin_args=tuple(lin_args),
        row_offsets=row_offsets,
        num_linear=len(folded),
        num_cols=len(embedding_size),
        cards=jnp.asarray(cards, jnp.int32).reshape(1, -1),
        out_size=out_size,
        out_pad=out_pad,
        compute_dtype=compute_dtype,
    )


# ----------------------------------------------------------------------------
# Forward pass: clip indices, pad batch to a multiple of the tile, run the
# fused kernel, slice back to (N, out_size).
# ----------------------------------------------------------------------------
def model_forward(x_categorical, fused, *, tile_b=2048):
    N = x_categorical.shape[0]
    C = fused["num_cols"]

    # big tile to amortize per-grid-step overhead, but keep >= 2 grid steps
    # when the batch allows so both v7x TensorCores get work.
    tb_half = _round_up(max(1, (N + 1) // 2), 8)
    tb = max(8, min(tile_b, tb_half))
    n_pad = _round_up(N, tb)

    x = x_categorical.astype(jnp.int32)
    x = jnp.clip(x, 0, fused["cards"] - 1)               # defensive: keep indices in-range
    if n_pad != N:
        x = jnp.pad(x, ((0, n_pad - N), (0, 0)))         # padded rows use index 0 (valid)

    kernel = _make_kernel(fused["row_offsets"], fused["num_linear"],
                          fused["compute_dtype"])

    def full_spec(arr):                                  # whole array resident in VMEM
        nd = arr.ndim
        return pl.BlockSpec(arr.shape, lambda i, _nd=nd: (0,) * _nd)

    lin_args = fused["lin_args"]
    in_specs = [pl.BlockSpec((tb, C), lambda i: (i, 0))]
    in_specs += [full_spec(a) for a in lin_args]

    # advisory cost hint for XLA scheduling around this tiny custom call
    flops_per_row = sum(2 * w.shape[0] * w.shape[1] for w in lin_args[0::2])
    bytes_accessed = (x.size * 4 + n_pad * fused["out_pad"] * 4
                      + sum(int(a.size) * a.dtype.itemsize for a in lin_args))
    cost = pl.CostEstimate(flops=int(flops_per_row * n_pad),
                           transcendentals=0,
                           bytes_accessed=int(bytes_accessed))

    out = pl.pallas_call(
        kernel,
        out_shape=jax.ShapeDtypeStruct((n_pad, fused["out_pad"]), jnp.float32),
        grid_spec=pltpu.PrefetchScalarGridSpec(
            num_scalar_prefetch=0,
            grid=(n_pad // tb,),
            in_specs=in_specs,
            out_specs=pl.BlockSpec((tb, fused["out_pad"]), lambda i: (i, 0)),
        ),
        compiler_params=pltpu.CompilerParams(
            dimension_semantics=("parallel",)),          # batch axis sharded across TCs
        cost_estimate=cost,
    )(x, *lin_args)
    return out[:N, :fused["out_size"]]


# ----------------------------------------------------------------------------
# Pure-JAX reference (unfused, original parameters) for correctness checking.
# ----------------------------------------------------------------------------
def _pure_jax_reference(x_categorical, emb_tables, linears, bns):
    cols = [jnp.take(t, x_categorical[:, i], axis=0) for i, t in enumerate(emb_tables)]
    h = jnp.concatenate(cols, axis=1).astype(jnp.float32)
    for li, (w, b) in enumerate(linears):
        h = h @ w.astype(jnp.float32) + jnp.reshape(b, (1, -1)).astype(jnp.float32)
        if li < len(bns):
            g, be, m, v = (jnp.reshape(a, (1, -1)).astype(jnp.float32) for a in bns[li])
            h = jnp.maximum(h, 0.0)
            h = (h - m) * lax.rsqrt(v + BN_EPS) * g + be
    return h


if __name__ == "__main__":
    # car-evaluation-like config: 6 categorical columns, small embeddings
    embedding_size = [(4, 2), (4, 2), (4, 2), (3, 2), (3, 2), (3, 2)]
    layers = [200, 100, 50]
    output_size = 4
    N = 64                                               # small batch for the self-test

    d_in = sum(nf for _, nf in embedding_size)
    key = jax.random.PRNGKey(0)
    k_emb, k_lin, k_bn, k_x = jax.random.split(key, 4)

    emb_tables = [
        0.5 * jax.random.normal(jax.random.fold_in(k_emb, i), (ni, nf), jnp.float32)
        for i, (ni, nf) in enumerate(embedding_size)
    ]

    def make_linear(k, fi, fo):
        w = jax.random.normal(k, (fi, fo), jnp.float32) / jnp.sqrt(jnp.float32(fi))
        b = jnp.full((fo,), 0.01, jnp.float32)
        return w, b

    widths = [d_in] + list(layers) + [output_size]
    linears = [make_linear(jax.random.fold_in(k_lin, i), widths[i], widths[i + 1])
               for i in range(len(widths) - 1)]

    def make_bn(k, h):   # gamma, beta, running_mean, running_var (deterministic)
        g = 1.0 + 0.1 * jax.random.normal(jax.random.fold_in(k, 0), (h,), jnp.float32)
        be = 0.05 * jnp.ones((h,), jnp.float32)
        m = 0.1 * jax.random.normal(jax.random.fold_in(k, 1), (h,), jnp.float32)
        v = 1.0 + jax.nn.sigmoid(
            jax.random.normal(jax.random.fold_in(k, 2), (h,), jnp.float32))
        return g, be, m, v

    bns = [make_bn(jax.random.fold_in(k_bn, i), h) for i, h in enumerate(layers)]

    # deterministic categorical inputs within each column's cardinality
    cards = jnp.array([ni for ni, _ in embedding_size], jnp.int32)
    raw = jax.random.randint(k_x, (N, len(embedding_size)), 0, 1_000_000)
    x_categorical = (raw % cards[None, :]).astype(jnp.int32)

    ref = _pure_jax_reference(x_categorical, emb_tables, linears, bns)

    # ---- f32 path (strict check) -------------------------------------------
    fused_f32 = prepare_fused_params(embedding_size, emb_tables, linears, bns,
                                     use_bf16=False)
    out_f32 = jax.block_until_ready(model_forward(x_categorical, fused_f32))
    assert out_f32.shape == (N, output_size)
    assert jnp.allclose(out_f32, ref, atol=1e-4, rtol=1e-4), "f32 mismatch vs reference"

    # ---- bf16 matmul-operand path (v6e/v7x MXU), f32 accumulation ----------
    fused_bf16 = prepare_fused_params(embedding_size, emb_tables, linears, bns,
                                      use_bf16=True)
    out_bf16 = jax.block_until_ready(model_forward(x_categorical, fused_bf16))
    assert out_bf16.shape == (N, output_size)
    assert jnp.allclose(out_bf16, ref, atol=1e-1, rtol=1e-1), "bf16 mismatch vs reference"

    print("KERNEL_OK")
</pallas_src>

<mosaic_0001>
module attributes {stable_mosaic.version = 11 : i64} {
  func.func @kernel(%arg0: i32, %arg1: memref<32x6xi32, #tpu.memory_space<vmem>>, %arg2: memref<128x256xf32, #tpu.memory_space<vmem>>, %arg3: memref<1x256xf32, #tpu.memory_space<vmem>>, %arg4: memref<256x128xf32, #tpu.memory_space<vmem>>, %arg5: memref<1x128xf32, #tpu.memory_space<vmem>>, %arg6: memref<128x128xf32, #tpu.memory_space<vmem>>, %arg7: memref<1x128xf32, #tpu.memory_space<vmem>>, %arg8: memref<128x128xf32, #tpu.memory_space<vmem>>, %arg9: memref<1x128xf32, #tpu.memory_space<vmem>>, %arg10: memref<32x128xf32, #tpu.memory_space<vmem>>) attributes {dimension_semantics = [#tpu.dimension_semantics<parallel>], iteration_bounds = array<i64: 2>, scalar_prefetch = 0 : i64, scratch_operands = 0 : i64, tpu.core_type = #tpu.core_type<tc>, window_params = [{transform_indices = @transform_0, window_bounds = array<i64: 32, 6>}, {pipeline_mode = #tpu.pipeline_mode<synchronous>, transform_indices = @transform_1, window_bounds = array<i64: 128, 256>}, {pipeline_mode = #tpu.pipeline_mode<synchronous>, transform_indices = @transform_2, window_bounds = array<i64: 1, 256>}, {pipeline_mode = #tpu.pipeline_mode<synchronous>, transform_indices = @transform_3, window_bounds = array<i64: 256, 128>}, {pipeline_mode = #tpu.pipeline_mode<synchronous>, transform_indices = @transform_4, window_bounds = array<i64: 1, 128>}, {pipeline_mode = #tpu.pipeline_mode<synchronous>, transform_indices = @transform_5, window_bounds = array<i64: 128, 128>}, {pipeline_mode = #tpu.pipeline_mode<synchronous>, transform_indices = @transform_6, window_bounds = array<i64: 1, 128>}, {pipeline_mode = #tpu.pipeline_mode<synchronous>, transform_indices = @transform_7, window_bounds = array<i64: 128, 128>}, {pipeline_mode = #tpu.pipeline_mode<synchronous>, transform_indices = @transform_8, window_bounds = array<i64: 1, 128>}, {transform_indices = @transform_9, window_bounds = array<i64: 32, 128>}]} {
    %c0 = arith.constant 0 : index
    %c0_0 = arith.constant 0 : index
    %0 = vector.load %arg1[%c0, %c0_0] : memref<32x6xi32, #tpu.memory_space<vmem>>, vector<32x6xi32>
    %1 = tpu.iota {dimensions = array<i32: 1>} : vector<32x128xi32>
    %2 = vector.extract_strided_slice %0 {offsets = [0, 0], sizes = [32, 1], strides = [1, 1]} : vector<32x6xi32> to vector<32x1xi32>
    %c0_i32 = arith.constant 0 : i32
    %3 = vector.broadcast %c0_i32 : i32 to vector<32x1xi32>
    %4 = arith.addi %2, %3 : vector<32x1xi32>
    %5 = vector.broadcast %4 : vector<32x1xi32> to vector<32x128xi32>
    %6 = arith.cmpi eq, %1, %5 : vector<32x128xi32>
    %7 = vector.extract_strided_slice %0 {offsets = [0, 1], sizes = [32, 1], strides = [1, 1]} : vector<32x6xi32> to vector<32x1xi32>
    %c4_i32 = arith.constant 4 : i32
    %8 = vector.broadcast %c4_i32 : i32 to vector<32x1xi32>
    %9 = arith.addi %7, %8 : vector<32x1xi32>
    %10 = vector.broadcast %9 : vector<32x1xi32> to vector<32x128xi32>
    %11 = arith.cmpi eq, %1, %10 : vector<32x128xi32>
    %12 = arith.ori %6, %11 : vector<32x128xi1>
    %13 = vector.extract_strided_slice %0 {offsets = [0, 2], sizes = [32, 1], strides = [1, 1]} : vector<32x6xi32> to vector<32x1xi32>
    %c8_i32 = arith.constant 8 : i32
    %14 = vector.broadcast %c8_i32 : i32 to vector<32x1xi32>
    %15 = arith.addi %13, %14 : vector<32x1xi32>
    %16 = vector.broadcast %15 : vector<32x1xi32> to vector<32x128xi32>
    %17 = arith.cmpi eq, %1, %16 : vector<32x128xi32>
    %18 = arith.ori %12, %17 : vector<32x128xi1>
    %19 = vector.extract_strided_slice %0 {offsets = [0, 3], sizes = [32, 1], strides = [1, 1]} : vector<32x6xi32> to vector<32x1xi32>
    %c12_i32 = arith.constant 12 : i32
    %20 = vector.broadcast %c12_i32 : i32 to vector<32x1xi32>
    %21 = arith.addi %19, %20 : vector<32x1xi32>
    %22 = vector.broadcast %21 : vector<32x1xi32> to vector<32x128xi32>
    %23 = arith.cmpi eq, %1, %22 : vector<32x128xi32>
    %24 = arith.ori %18, %23 : vector<32x128xi1>
    %25 = vector.extract_strided_slice %0 {offsets = [0, 4], sizes = [32, 1], strides = [1, 1]} : vector<32x6xi32> to vector<32x1xi32>
    %c15_i32 = arith.constant 15 : i32
    %26 = vector.broadcast %c15_i32 : i32 to vector<32x1xi32>
    %27 = arith.addi %25, %26 : vector<32x1xi32>
    %28 = vector.broadcast %27 : vector<32x1xi32> to vector<32x128xi32>
    %29 = arith.cmpi eq, %1, %28 : vector<32x128xi32>
    %30 = arith.ori %24, %29 : vector<32x128xi1>
    %31 = vector.extract_strided_slice %0 {offsets = [0, 5], sizes = [32, 1], strides = [1, 1]} : vector<32x6xi32> to vector<32x1xi32>
    %c18_i32 = arith.constant 18 : i32
    %32 = vector.broadcast %c18_i32 : i32 to vector<32x1xi32>
    %33 = arith.addi %31, %32 : vector<32x1xi32>
    %34 = vector.broadcast %33 : vector<32x1xi32> to vector<32x128xi32>
    %35 = arith.cmpi eq, %1, %34 : vector<32x128xi32>
    %36 = arith.ori %30, %35 : vector<32x128xi1>
    %37 = arith.extui %36 : vector<32x128xi1> to vector<32x128xi32>
    %38 = arith.sitofp %37 : vector<32x128xi32> to vector<32x128xf32>
    %c0_1 = arith.constant 0 : index
    %c0_2 = arith.constant 0 : index
    %39 = vector.load %arg2[%c0_1, %c0_2] : memref<128x256xf32, #tpu.memory_space<vmem>>, vector<128x256xf32>
    %cst = arith.constant dense<0.000000e+00> : vector<32x256xf32>
    %40 = tpu.matmul %38, %39, %cst {dimension_numbers = #tpu.dot_dimension_numbers<[1], [0], [0], [1], [0, 0, 1, 1], [], []>} : vector<32x128xf32>, vector<128x256xf32>, vector<32x256xf32> -> vector<32x256xf32>
    %c0_3 = arith.constant 0 : index
    %c0_4 = arith.constant 0 : index
    %41 = vector.load %arg3[%c0_3, %c0_4] : memref<1x256xf32, #tpu.memory_space<vmem>>, vector<1x256xf32>
    %42 = vector.broadcast %41 : vector<1x256xf32> to vector<32x256xf32>
    %43 = arith.addf %40, %42 : vector<32x256xf32>
    %cst_5 = arith.constant 0.000000e+00 : f32
    %44 = vector.broadcast %cst_5 : f32 to vector<32x256xf32>
    %45 = arith.maximumf %43, %44 : vector<32x256xf32>
    %c0_6 = arith.constant 0 : index
    %c0_7 = arith.constant 0 : index
    %46 = vector.load %arg4[%c0_6, %c0_7] : memref<256x128xf32, #tpu.memory_space<vmem>>, vector<256x128xf32>
    %cst_8 = arith.constant dense<0.000000e+00> : vector<32x128xf32>
    %47 = tpu.matmul %45, %46, %cst_8 {dimension_numbers = #tpu.dot_dimension_numbers<[1], [0], [0], [1], [0, 0, 1, 1], [], []>} : vector<32x256xf32>, vector<256x128xf32>, vector<32x128xf32> -> vector<32x128xf32>
    %c0_9 = arith.constant 0 : index
    %c0_10 = arith.constant 0 : index
    %48 = vector.load %arg5[%c0_9, %c0_10] : memref<1x128xf32, #tpu.memory_space<vmem>>, vector<1x128xf32>
    %49 = vector.broadcast %48 : vector<1x128xf32> to vector<32x128xf32>
    %50 = arith.addf %47, %49 : vector<32x128xf32>
    %cst_11 = arith.constant 0.000000e+00 : f32
    %51 = vector.broadcast %cst_11 : f32 to vector<32x128xf32>
    %52 = arith.maximumf %50, %51 : vector<32x128xf32>
    %c0_12 = arith.constant 0 : index
    %c0_13 = arith.constant 0 : index
    %53 = vector.load %arg6[%c0_12, %c0_13] : memref<128x128xf32, #tpu.memory_space<vmem>>, vector<128x128xf32>
    %cst_14 = arith.constant dense<0.000000e+00> : vector<32x128xf32>
    %54 = tpu.matmul %52, %53, %cst_14 {dimension_numbers = #tpu.dot_dimension_numbers<[1], [0], [0], [1], [0, 0, 1, 1], [], []>} : vector<32x128xf32>, vector<128x128xf32>, vector<32x128xf32> -> vector<32x128xf32>
    %c0_15 = arith.constant 0 : index
    %c0_16 = arith.constant 0 : index
    %55 = vector.load %arg7[%c0_15, %c0_16] : memref<1x128xf32, #tpu.memory_space<vmem>>, vector<1x128xf32>
    %56 = vector.broadcast %55 : vector<1x128xf32> to vector<32x128xf32>
    %57 = arith.addf %54, %56 : vector<32x128xf32>
    %cst_17 = arith.constant 0.000000e+00 : f32
    %58 = vector.broadcast %cst_17 : f32 to vector<32x128xf32>
    %59 = arith.maximumf %57, %58 : vector<32x128xf32>
    %c0_18 = arith.constant 0 : index
    %c0_19 = arith.constant 0 : index
    %60 = vector.load %arg8[%c0_18, %c0_19] : memref<128x128xf32, #tpu.memory_space<vmem>>, vector<128x128xf32>
    %cst_20 = arith.constant dense<0.000000e+00> : vector<32x128xf32>
    %61 = tpu.matmul %59, %60, %cst_20 {dimension_numbers = #tpu.dot_dimension_numbers<[1], [0], [0], [1], [0, 0, 1, 1], [], []>} : vector<32x128xf32>, vector<128x128xf32>, vector<32x128xf32> -> vector<32x128xf32>
    %c0_21 = arith.constant 0 : index
    %c0_22 = arith.constant 0 : index
    %62 = vector.load %arg9[%c0_21, %c0_22] : memref<1x128xf32, #tpu.memory_space<vmem>>, vector<1x128xf32>
    %63 = vector.broadcast %62 : vector<1x128xf32> to vector<32x128xf32>
    %64 = arith.addf %61, %63 : vector<32x128xf32>
    %c0_23 = arith.constant 0 : index
    %c0_24 = arith.constant 0 : index
    %65 = vector.load %arg10[%c0_23, %c0_24] : memref<32x128xf32, #tpu.memory_space<vmem>>, vector<32x128xf32>
    tpu.vector_store %arg10[%c0_23, %c0_24], %64 {strides = array<i32>} : memref<32x128xf32, #tpu.memory_space<vmem>>, vector<32x128xf32>,
    return
  }
  func.func @transform_0(%arg0: i32) -> (i32, i32) {
    %c0_i32 = arith.constant 0 : i32
    %c0_i32_0 = arith.constant 0 : i32
    return %arg0, %c0_i32 : i32, i32
  }
  func.func @transform_1(%arg0: i32) -> (i32, i32) {
    %c0_i32 = arith.constant 0 : i32
    %c0_i32_0 = arith.constant 0 : i32
    %c0_i32_1 = arith.constant 0 : i32
    return %c0_i32, %c0_i32_0 : i32, i32
  }
  func.func @transform_2(%arg0: i32) -> (i32, i32) {
    %c0_i32 = arith.constant 0 : i32
    %c0_i32_0 = arith.constant 0 : i32
    %c0_i32_1 = arith.constant 0 : i32
    return %c0_i32, %c0_i32_0 : i32, i32
  }
  func.func @transform_3(%arg0: i32) -> (i32, i32) {
    %c0_i32 = arith.constant 0 : i32
    %c0_i32_0 = arith.constant 0 : i32
    %c0_i32_1 = arith.constant 0 : i32
    return %c0_i32, %c0_i32_0 : i32, i32
  }
  func.func @transform_4(%arg0: i32) -> (i32, i32) {
    %c0_i32 = arith.constant 0 : i32
    %c0_i32_0 = arith.constant 0 : i32
    %c0_i32_1 = arith.constant 0 : i32
    return %c0_i32, %c0_i32_0 : i32, i32
  }
  func.func @transform_5(%arg0: i32) -> (i32, i32) {
    %c0_i32 = arith.constant 0 : i32
    %c0_i32_0 = arith.constant 0 : i32
    %c0_i32_1 = arith.constant 0 : i32
    return %c0_i32, %c0_i32_0 : i32, i32
  }
  func.func @transform_6(%arg0: i32) -> (i32, i32) {
    %c0_i32 = arith.constant 0 : i32
    %c0_i32_0 = arith.constant 0 : i32
    %c0_i32_1 = arith.constant 0 : i32
    return %c0_i32, %c0_i32_0 : i32, i32
  }
  func.func @transform_7(%arg0: i32) -> (i32, i32) {
    %c0_i32 = arith.constant 0 : i32
    %c0_i32_0 = arith.constant 0 : i32
    %c0_i32_1 = arith.constant 0 : i32
    return %c0_i32, %c0_i32_0 : i32, i32
  }
  func.func @transform_8(%arg0: i32) -> (i32, i32) {
    %c0_i32 = arith.constant 0 : i32
    %c0_i32_0 = arith.constant 0 : i32
    %c0_i32_1 = arith.constant 0 : i32
    return %c0_i32, %c0_i32_0 : i32, i32
  }
  func.func @transform_9(%arg0: i32) -> (i32, i32) {
    %c0_i32 = arith.constant 0 : i32
    %c0_i32_0 = arith.constant 0 : i32
    return %arg0, %c0_i32 : i32, i32
  }
}

</mosaic_0001>

<bundles_post_ra>
// kernel: tpu_custom_call.1
= control target key start
LH: loop header
LB: loop body
LE: loop exit
PB: predicated region body
PF: predicated region fallthrough
CT: control target
= control target key end

     0   :  { %s2160_s0 = inlined_call_operand.vmem [shape: s32[64,6], index: 0, kind: input, shape index: {}]   ;;  %s2161_s1 = inlined_call_operand.hbm [shape: f32[128,256], index: 1, kind: input, shape index: {}]   ;;  %s2162_s2 = inlined_call_operand.vmem [shape: f32[1,256], index: 2, kind: input, shape index: {}]   ;;  %s2163_s3 = inlined_call_operand.hbm [shape: f32[256,128], index: 3, kind: input, shape index: {}]   ;;  %s2164_s4 = inlined_call_operand.vmem [shape: f32[1,128], index: 4, kind: input, shape index: {}]   ;;  %s2165_s5 = inlined_call_operand.hbm [shape: f32[128,128], index: 5, kind: input, shape index: {}]   ;;  %s2166_s6 = inlined_call_operand.vmem [shape: f32[1,128], index: 6, kind: input, shape index: {}]   ;;  %s2167_s7 = inlined_call_operand.hbm [shape: f32[128,128], index: 7, kind: input, shape index: {}]   ;;  %s2168_s8 = inlined_call_operand.vmem [shape: f32[1,128], index: 8, kind: input, shape index: {}]   ;;  %s2169_s9 = inlined_call_operand.hbm [shape: f32[64,128], index: 9, kind: output, shape index: {}]  }
   0x1   :  { %2181 = sst [smem:[#allocation19_spill]] %s2163_s3 }
   0x2   :  { %14 = vsyncpa [#allocation3], 0 }
   0x3   :  { %15 = vsyncpa [#allocation6], 0 }
   0x4   :  { %16 = vsyncpa [#allocation9], 0 }
   0x5   :  { %17 = vsyncpa [#allocation4], 0 }
   0x6   :  { %19 = vsyncpa [#allocation4 + $0x1], 0  ;;  %s1838_s30 = smov 0   ;;  %s1840_s10 = smov 0  }
   0x7   :  { %s1842_s11 = smov 0   ;;  %s1844_s12 = smov 0  }
   0x8 LB: > { %2182 = sst [smem:[#allocation15_spill]] %s1764_s11  ;;  %s1859_s13 = sadd.s32 4294967295, %s1768_s12   ;;  %s1768_s12 = sphi %s1844_s12, %s2204_s12   ;;  %s1764_s11 = sphi %s1842_s11, %s2206_s11   ;;  %s1760_s10 = sphi %s1840_s10, %s2208_s10   ;;  %s1756_s30 = sphi %s1838_s30, %s2207_s30  }
   0x9   : > { %s1153_s14 = sadd.s32 4294967294, %s1768_s12   ;;  %s1863_s15 = sadd.s32 1, %s1768_s12  }
   0xa   : > { %2183 = sst [smem:[#allocation16_spill]] %s1863_s15  ;;  %s226_s16 = sadd.s32 1, %s1764_s11 }
   0xb   : > { %s223_s17 = ssub.s32 %s1768_s12, %s1863_s15  ;;  %p236_p0 = scmp.ne.s32.totalorder %s1764_s11, %s1760_s10 }
   0xc   : > { %p224_p1 = scmp.eq.s32.totalorder %s223_s17, 0  ;;  %p237_p2 = scmp.eq.s32.totalorder %s1859_s13, 1 }
   0xd   : > { %p242_p3 = scmp.ne.s32.totalorder %s1760_s10, %s1756_s30  ;;  %p243_p4 = scmp.eq.s32.totalorder %s1153_s14, 1 }
   0xe   : > { %s1874_s18 = scalar_select %p224_p1, %s1764_s11, %s226_s16  }
   0xf   : > { %p1876_p5 = por %p237_p2, %p236_p0  ;;  %p1880_p6 = por %p243_p4, %p242_p3 }
  0x10   : > { %2184 = sst [smem:[#allocation17_spill]] %s1874_s18  ;;  %p1154_p7 = scmp.ge.s32.totalorder %s1768_s12, 1 }
  0x11   : > { %s2185_s19 = scalar_select %p1876_p5, 1, 0 }
  0x12   : > { %s2186_s20 = scalar_select %p1880_p6, 1, 0 }
  0x13   : > { %p250_p8 = scmp.lt.s32.totalorder %s1768_s12, 3  ;;  %p2170_p9 = scmp.eq.s32.totalorder %s1859_s13, 0 }
  0x14   : > { %2187 = sst [smem:[#allocation18_spill]] %s2186_s20  ;;  %s1770_s22 = smov [#allocation5]  }
  0x15   : > { %p1887_p10 = pnand %p1154_p7, %p250_p8  ;;  %s278_s23 = sshll.u32 %s1770_s22, 4  ;;  %s279_s23 = int_to_ptr.vmem [resolvable:$true] %s278_s23 }
  0x16   : > { %s1771_s25 = smov [#allocation2]   ;;  %s2190_s3 = sld [smem:[#allocation19_spill]] }
  0x17   : > { %s2188_s21 = scalar_select %p1887_p10, 1, 0 }
  0x18   : > { %p1487_p11 = pneg %p1887_p10  ;;  %s262_s26 = sshll.u32 %s1771_s25, 4  ;;  %s1899_s26 = int_to_ptr.vmem [resolvable:$true] %s262_s26 }
  0x1a   : > { %p1895_p12 = pnand %p2170_p9, %p1487_p11 }
  0x1c   : > { %s1582_s29 = scalar_lea.hbm %s2190_s3, 4096  ;;  %p1909_p0 = pneg %p1895_p12 }
  0x1d   : > { %p1583_p13 = scmp.ne.s32.totalorder %s2190_s3, %s1582_s29  ;;  %p1589_p3 = scmp.lt.u32.totalorder %s1582_s29, %s2190_s3 }
  0x1f   : > { %p1585_p1 = pnand %p1909_p0, %p1583_p13 }
  0x21   : > { %p1586_p2 = pneg %p1585_p1 }
  0x23   : > { %p1591_p4 = pnand %p1589_p3, %p1586_p2 }
  0x25   : > { %1594 = shalt.err (!%p1591_p4)
}
  0x26   : > { %s1595_s27 = scalar_lea.vmem %s279_s23, 4096  ;;  %p1603_p9 = scmp.lt.s32.totalorder %s279_s23, %s279_s23 }
  0x27   : > { %p1596_p7 = scmp.ne.s32.totalorder %s279_s23, %s1595_s27  ;;  %p1604_p6 = scmp.lt.s32.totalorder %s1595_s27, %s1595_s27 }
  0x29   : > { %p1598_p8 = pnand %p1596_p7, %p1909_p0  ;;  %p1605_p5 = por %p1604_p6, %p1603_p9 }
  0x2b   : > { %p1599_p11 = pneg %p1598_p8 }
  0x2d   : > { %p1606_p10 = pnand %p1605_p5, %p1599_p11 }
  0x2f   : > { %1609 = shalt.err (!%p1606_p10)
}
  0x30   : > { %s2177_s28 = smov 128   ;;  %s2179_s14 = smov 8  }
  0x31   : > { %1493 = dma.hbm_to_vmem [thread:$0]  (!%p1895_p12), %s2190_s3, 4096, %s279_s23, [#allocation6], %s2177_s28, %s2177_s28, %s2179_s14  }
  0x32   : > { %s1610_s18 = scalar_lea.hbm %s2161_s1, 4096 }
  0x33   : > { %p1611_p5 = scmp.ne.s32.totalorder %s2161_s1, %s1610_s18  ;;  %p1617_p10 = scmp.lt.u32.totalorder %s1610_s18, %s2161_s1 }
  0x35   : > { %p1613_p6 = pnand %p1611_p5, %p1909_p0 }
  0x37   : > { %p1614_p9 = pneg %p1613_p6 }
  0x39   : > { %p1619_p13 = pnand %p1617_p10, %p1614_p9 }
  0x3b   : > { %1622 = shalt.err (!%p1619_p13)
}
  0x3c   : > { %s1623_s23 = scalar_lea.vmem %s1899_s26, 4096  ;;  %p1631_p4 = scmp.lt.s32.totalorder %s1899_s26, %s1899_s26 }
  0x3d   : > { %p1624_p1 = scmp.ne.s32.totalorder %s1899_s26, %s1623_s23  ;;  %p1632_p7 = scmp.lt.s32.totalorder %s1623_s23, %s1623_s23 }
  0x3f   : > { %p1626_p2 = pnand %p1624_p1, %p1909_p0  ;;  %p1633_p8 = por %p1632_p7, %p1631_p4 }
  0x41   : > { %p1627_p3 = pneg %p1626_p2 }
  0x43   : > { %p1634_p11 = pnand %p1633_p8, %p1627_p3 }
  0x45   : > { %1637 = shalt.err (!%p1634_p11)
}
  0x46   : > { %s1774_s11 = smov 256   ;;  %s1775_s15 = smov 16  }
  0x47   : > { %1490 = dma.hbm_to_vmem [thread:$0]  (!%p1895_p12), %s2161_s1, 4096, %s1899_s26, [#allocation3], %s1774_s11, %s1774_s11, %s1775_s15  }
  0x48   : > { %s1776_s29 = smov [#allocation7]   ;;  %s1777_s22 = smov [#allocation8]  }
  0x49   : > { %s294_s16 = sshll.u32 %s1776_s29, 4  ;;  %s310_s25 = sshll.u32 %s1777_s22, 4  ;;  %s295_s16 = int_to_ptr.vmem [resolvable:$true] %s294_s16  ;;  %s1951_s25 = int_to_ptr.vmem [resolvable:$true] %s310_s25 }
  0x4a   : > { %s1638_s28 = scalar_lea.hbm %s2165_s5, 2048 }
  0x4b   : > { %p1639_p5 = scmp.ne.s32.totalorder %s2165_s5, %s1638_s28  ;;  %p1645_p10 = scmp.lt.u32.totalorder %s1638_s28, %s2165_s5 }
  0x4d   : > { %p1641_p6 = pnand %p1639_p5, %p1909_p0 }
  0x4f   : > { %p1642_p9 = pneg %p1641_p6 }
  0x51   : > { %p1647_p13 = pnand %p1645_p10, %p1642_p9 }
  0x53   : > { %1650 = shalt.err (!%p1647_p13)
}
  0x54   : > { %s1651_s11 = scalar_lea.vmem %s295_s16, 2048  ;;  %p1659_p4 = scmp.lt.s32.totalorder %s295_s16, %s295_s16 }
  0x55   : > { %p1652_p1 = scmp.ne.s32.totalorder %s295_s16, %s1651_s11  ;;  %p1660_p7 = scmp.lt.s32.totalorder %s1651_s11, %s1651_s11 }
  0x57   : > { %p1654_p2 = pnand %p1652_p1, %p1909_p0  ;;  %p1661_p8 = por %p1660_p7, %p1659_p4 }
  0x59   : > { %p1655_p3 = pneg %p1654_p2 }
  0x5b   : > { %p1662_p11 = pnand %p1661_p8, %p1655_p3 }
  0x5d   : > { %1665 = shalt.err (!%p1662_p11)
}
  0x5e   : > { %s2192_s3 = smov 8   ;;  %s2193_s14 = smov 128  }
  0x5f   : > { %1496 = dma.hbm_to_vmem [thread:$0]  (!%p1895_p12), %s2165_s5, 2048, %s295_s16, [#allocation6], %s2193_s14, %s2193_s14, %s2192_s3  }
  0x60   : > { %s1666_s22 = scalar_lea.hbm %s2167_s7, 2048 }
  0x61   : > { %p1667_p5 = scmp.ne.s32.totalorder %s2167_s7, %s1666_s22  ;;  %p1673_p10 = scmp.lt.u32.totalorder %s1666_s22, %s2167_s7 }
  0x63   : > { %p1669_p6 = pnand %p1667_p5, %p1909_p0 }
  0x65   : > { %p1670_p9 = pneg %p1669_p6 }
  0x67   : > { %p1675_p13 = pnand %p1673_p10, %p1670_p9 }
  0x69   : > { %1678 = shalt.err (!%p1675_p13)
}
  0x6a   : > { %s1679_s16 = scalar_lea.vmem %s1951_s25, 2048  ;;  %p1687_p4 = scmp.lt.s32.totalorder %s1951_s25, %s1951_s25 }
  0x6b   : > { %p1680_p1 = scmp.ne.s32.totalorder %s1951_s25, %s1679_s16  ;;  %p1688_p7 = scmp.lt.s32.totalorder %s1679_s16, %s1679_s16 }
  0x6d   : > { %p1682_p2 = pnand %p1680_p1, %p1909_p0  ;;  %p1689_p8 = por %p1688_p7, %p1687_p4 }
  0x6f   : > { %p1683_p3 = pneg %p1682_p2 }
  0x71   : > { %p1690_p11 = pnand %p1689_p8, %p1683_p3 }
  0x73   : > { %1693 = shalt.err (!%p1690_p11)
}
  0x74   : > { %1499 = dma.hbm_to_vmem [thread:$0]  (!%p1895_p12), %s2167_s7, 2048, %s1951_s25, [#allocation9], %s2193_s14, %s2193_s14, %s2192_s3  }
  0x75   : > { %p2194_p5 = scmp.ne.s32.totalorder %s2188_s21, 0 }
  0x76   : > { %p2195_p0 = scmp.eq.s32.totalorder (!%p2194_p5), %s1859_s13, 0 }
  0x77   : > { %338 = sbr.rel (%p2194_p5) target bundleno = 1229 (0x4cd), region = 56 }
  0x7e   : > { %1739 = dma.done.wait (%p2195_p0), [#allocation3], 4096   ;;  %p2196_p6 = pmov %p2195_p0 }
  0x7f   : > { %p2197_p9 = pmov %p2195_p0 }
  0x80   : > { %1741 = vsyncadd (%p2196_p6), [#allocation3], 4294963200 }
  0x81   : > { %1743 = dma.done.wait (%p2197_p9), [#allocation6], 6144   ;;  %p2198_p10 = pmov %p2195_p0 }
  0x82   : > { %p2199_p13 = pmov %p2195_p0 }
  0x83   : > { %1745 = vsyncadd (%p2198_p10), [#allocation6], 4294961152 }
  0x84   : > { %1747 = dma.done.wait (%p2199_p13), [#allocation9], 2048   ;;  %p2200_p12 = pmov %p2195_p0 }
  0x85   : > { %s1166_s21 = sshll.u32 %s1859_s13, 2  ;;  %v1778_v0 = vmov 0   ;;  %v1779_v1 = vmov 2   ;;  %v544_v5 = vld [vmem:[#allocation2 + $0x8] sm:$0xff]  ;;  %v546_v6 = vld [vmem:[#allocation2 + $0x18] sm:$0xff]  ;;  %v543_v7 = vld [vmem:[#allocation2] sm:$0xff] }
  0x86   : > { %1749 = vsyncadd (%p2200_p12), [#allocation9], 4294965248  ;;  %1562 = vset.pattern.permute.xlu0 %v1778_v0  ;;  %p387_p1 = scmp.lt.s32.totalorder %s1166_s21, 7  ;;  %1565 = vset.pattern.permute.xlu1 %v1779_v1  ;;  %v545_v8 = vld [vmem:[#allocation2 + $0x10] sm:$0xff]  ;;  %v548_v9 = vld [vmem:[#allocation2 + $0x28] sm:$0xff]  ;;  %v1780_v12 = vmov 1   ;;  %v1341_v13 = vpack.c.bf16 %v546_v6, %v544_v5 }
  0x87   : > { %v550_v11 = vld [vmem:[#allocation2 + $0x38] sm:$0xff]  ;;  %v1343_v14 = vpack.c.bf16 %v545_v8, %v543_v7  ;;  %v547_v16 = vld [vmem:[#allocation2 + $0x20] sm:$0xff]  ;;  %v549_v17 = vld [vmem:[#allocation2 + $0x30] sm:$0xff]  ;;  %v1781_v18 = vmov 3   ;;  %v1782_v29 = vmov 4   ;;  %v1783_v48 = vmov 5  }
  0x88   : > { %s2210_s21 = smov (!%p387_p1, %s1166_s21), 7  ;;  %v1345_v15 = vpack.c.bf16 %v550_v11, %v548_v9  ;;  %v552_v19 = vld [vmem:[#allocation2 + $0x48] sm:$0xff]  ;;  %v554_v20 = vld [vmem:[#allocation2 + $0x58] sm:$0xff]  ;;  %1342 = vmatprep.subr.bf16.mxu0 %v1341_v13  ;;  %v1347_v23 = vpack.c.bf16 %v549_v17, %v547_v16  ;;  %v551_v25 = vld [vmem:[#allocation2 + $0x40] sm:$0xff]  ;;  %v1784_v57 = vmov 0.0   ;;  %s383_s23 = sand.u32 1, %s1760_s10  }
  0x89   : > { %s1167_s24 = sshll.u32 %s2210_s21, 3  ;;  %1344 = vmatpush1.bf16.msra.mxu0 %v1343_v14  ;;  %v1349_v24 = vpack.c.bf16 %v554_v20, %v552_v19  ;;  %v553_v26 = vld [vmem:[#allocation2 + $0x50] sm:$0xff]  ;;  %v556_v27 = vld [vmem:[#allocation2 + $0x68] sm:$0xff]  ;;  %v558_v28 = vld [vmem:[#allocation2 + $0x78] sm:$0xff]  ;;  %651 = vmatprep.mubr.f32.mxu0 %v1784_v57  ;;  %s1165_s18 = sshll.u32 %s383_s23, 5 }
  0x8a   : > { %s2019_s3 = scalar_lea.vmem %s2160_s0, %s1167_s24  ;;  %1346 = vmatprep.subr.bf16.mxu0 %v1345_v15  ;;  %v1351_v31 = vpack.c.bf16 %v553_v26, %v551_v25  ;;  %v1353_v33 = vpack.c.bf16 %v558_v28, %v556_v27  ;;  %v555_v34 = vld [vmem:[#allocation2 + $0x60] sm:$0xff]  ;;  %v557_v35 = vld [vmem:[#allocation2 + $0x70] sm:$0xff]  ;;  %v560_v36 = vld [vmem:[#allocation2 + $0x88] sm:$0xff]  ;;  %s385_s11 = scalar_lea.vmem [#allocation10], %s1165_s18 }
  0x8b   : > { %v393_v2 = vld [vmem:[%s2019_s3] sm:$0xff]  ;;  %v2025_v21 = vld [vmem:[%s2019_s3 + $0x8] sm:$0xff]  ;;  %v2030_v30 = vld [vmem:[%s2019_s3 + $0x10] sm:$0xff]  ;;  %v1355_v39 = vpack.c.bf16 %v557_v35, %v555_v34  ;;  %s1050_s15 = sshll.u32 %s385_s11, 4  ;;  %s1180_s21 = sshll.u32 %s1859_s13, 9  ;;  %s2112_s15 = int_to_ptr.vmem [resolvable:$true] %s1050_s15 }
  0x8c   : > { %400 = vperm.xlu0 %1562, %v393_v2   ;;  %v439_v3 = vadd.s32 8, %v393_v2  ;;  %v415_v4 = vadd.s32 4, %v393_v2  ;;  %v463_v10 = vadd.s32 12, %v393_v2  ;;  %v487_v22 = vadd.s32 15, %v393_v2  ;;  %v562_v37 = vld [vmem:[#allocation2 + $0x98] sm:$0xff]  ;;  %v559_v41 = vld [vmem:[#allocation2 + $0x80] sm:$0xff]  ;;  %s2117_s25 = scalar_lea.hbm %s2169_s9, %s1180_s21 }
  0x8d   : > { %1348 = vmatpush1.bf16.msra.mxu0 %v1347_v23  ;;  %v416_v32 = vadd.s32 4, %v2025_v21  ;;  %v2035_v38 = vld [vmem:[%s2019_s3 + $0x18] sm:$0xff]  ;;  %v1357_v40 = vpack.c.bf16 %v562_v37, %v560_v36  ;;  %v561_v42 = vld [vmem:[#allocation2 + $0x90] sm:$0xff]  ;;  %v511_v43 = vadd.s32 18, %v393_v2  ;;  %v564_v44 = vld [vmem:[#allocation2 + $0xa8] sm:$0xff]  ;;  %v440_v46 = vadd.s32 8, %v2025_v21 }
  0x8e   : > { %444 = vperm.xlu1 %1565, %v439_v3   ;;  %1350 = vmatprep.subr.bf16.mxu0 %v1349_v24  ;;  %v566_v45 = vld [vmem:[#allocation2 + $0xb8] sm:$0xff]  ;;  %v1359_v47 = vpack.c.bf16 %v561_v42, %v559_v41  ;;  %v563_v50 = vld [vmem:[#allocation2 + $0xa0] sm:$0xff]  ;;  %v565_v51 = vld [vmem:[#allocation2 + $0xb0] sm:$0xff]  ;;  %v464_v54 = vadd.s32 12, %v2025_v21  ;;  %v441_v55 = vadd.s32 8, %v2030_v30  ;;  %v442_v63 = vadd.s32 8, %v2035_v38 }
  0x8f   : > { %v1361_v49 = vpack.c.bf16 %v566_v45, %v564_v44  ;;  %v568_v52 = vld [vmem:[#allocation2 + $0xc8] sm:$0xff]  ;;  %v570_v53 = vld [vmem:[#allocation2 + $0xd8] sm:$0xff]  ;;  %v1363_v56 = vpack.c.bf16 %v565_v51, %v563_v50  ;;  %v567_v59 = vld [vmem:[#allocation2 + $0xc0] sm:$0xff]  ;;  %v514_v5 = vadd.s32 18, %v2035_v38  ;;  %v417_v6 = vadd.s32 4, %v2030_v30  ;;  %s2119_s3 = scalar_lea.sflag [#allocation4], %s383_s23 }
  0x90   : > { %1563 = vset.pattern.permute.xlu0 %v1780_v12  ;;  %v1365_v58 = vpack.c.bf16 %v570_v53, %v568_v52  ;;  %v569_v60 = vld [vmem:[#allocation2 + $0xd0] sm:$0xff]  ;;  %v572_v61 = vld [vmem:[#allocation2 + $0xe8] sm:$0xff]  ;;  %v574_v62 = vld [vmem:[#allocation2 + $0xf8] sm:$0xff]  ;;  %v512_v8 = vadd.s32 18, %v2025_v21  ;;  %v465_v9 = vadd.s32 12, %v2030_v30  ;;  %v418_v11 = vadd.s32 4, %v2035_v38 }
  0x91   : > { %420 = vperm.xlu0 %1563, %v415_v4   ;;  %1352 = vmatpush1.bf16.msra.mxu0 %v1351_v31  ;;  %v1369_v2 = vpack.c.bf16 %v574_v62, %v572_v61  ;;  %v571_v3 = vld [vmem:[#allocation2 + $0xe0] sm:$0xff]  ;;  %v573_v4 = vld [vmem:[#allocation2 + $0xf0] sm:$0xff]  ;;  %v513_v13 = vadd.s32 18, %v2030_v30  ;;  %v466_v14 = vadd.s32 12, %v2035_v38  ;;  %v490_v15 = vadd.s32 15, %v2035_v38  ;;  %v701_v17 = vld [vmem:[#allocation5 + $0x88] sm:$0xff] }
  0x92   : > { %1566 = vset.pattern.permute.xlu1 %v1781_v18  ;;  %1354 = vmatprep.subr.bf16.mxu0 %v1353_v33  ;;  %v1371_v7 = vpack.c.bf16 %v573_v4, %v571_v3  ;;  %v700_v16 = vld [vmem:[#allocation5 + $0x80] sm:$0xff]  ;;  %v686_v25 = vld [vmem:[#allocation5 + $0x10] sm:$0xff]  ;;  %v687_v26 = vld [vmem:[#allocation5 + $0x18] sm:$0xff]  ;;  %s1694_s14 = scalar_lea.vmem %s2112_s15, 512  ;;  %p2201_p3 = scmp.ne.s32.totalorder %s2185_s19, 0 }
  0x93   : > { %468 = vperm.xlu1 %1566, %v463_v10   ;;  %v489_v10 = vadd.s32 15, %v2030_v30  ;;  %v684_v19 = vld [vmem:[#allocation5] sm:$0xff]  ;;  %v1373_v20 = vpack.c.bf16 %v701_v17, %v700_v16  ;;  %v1379_v28 = vpack.c.bf16 %v687_v26, %v686_v25  ;;  %v689_v31 = vld [vmem:[#allocation5 + $0x28] sm:$0xff]  ;;  %v707_v33 = vld [vmem:[#allocation5 + $0xb8] sm:$0xff]  ;;  %p1695_p2 = scmp.ne.s32.totalorder %s2112_s15, %s1694_s14  ;;  %s1785_s13 = smov [#allocation10]  }
  0x94   : > { %v704_v27 = vld [vmem:[#allocation5 + $0xa0] sm:$0xff]  ;;  %v690_v36 = vld [vmem:[#allocation5 + $0x30] sm:$0xff]  ;;  %v691_v37 = vld [vmem:[#allocation5 + $0x38] sm:$0xff]  ;;  %s1698_s28 = sshll.u32 %s1785_s13, 4  ;;  %s1699_s28 = int_to_ptr.vmem [resolvable:$false] %s1698_s28 }
  0x95   : > { %1564 = vset.pattern.permute.xlu0 %v1778_v0  ;;  %1356 = vmatpush1.bf16.msra.mxu0 %v1355_v39  ;;  %v488_v0 = vadd.s32 15, %v2025_v21  ;;  %v709_v39 = vld [vmem:[#allocation5 + $0xc8] sm:$0xff]  ;;  %v692_v42 = vld [vmem:[#allocation5 + $0x40] sm:$0xff]  ;;  %v710_v44 = vld [vmem:[#allocation5 + $0xd0] sm:$0xff]  ;;  %p1696_p4 = pnand %p1695_p2, %p2201_p3  ;;  %s1700_s20 = scalar_lea.vmem %s1699_s28, 1024 }
  0x96   : > { %403 = vperm.xlu0 %1564, %v2025_v21   ;;  %1358 = vmatprep.subr.bf16.mxu0 %v1357_v40  ;;  %v702_v21 = vld [vmem:[#allocation5 + $0x90] sm:$0xff]  ;;  %v1387_v40 = vpack.c.bf16 %v691_v37, %v690_v36  ;;  %v711_v45 = vld [vmem:[#allocation5 + $0xd8] sm:$0xff]  ;;  %v712_v50 = vld [vmem:[#allocation5 + $0xe0] sm:$0xff]  ;;  %p1701_p8 = scmp.lt.s32.totalorder %s2112_s15, %s1699_s28  ;;  %p1702_p11 = scmp.lt.s32.totalorder %s1700_s20, %s1694_s14 }
  0x97   : > { %1567 = vset.pattern.permute.xlu1 %v1782_v29  ;;  %1374 = vmatprep.subr.bf16.mxu1 %v1373_v20  ;;  %v713_v51 = vld [vmem:[#allocation5 + $0xe8] sm:$0xff]  ;;  %v714_v25 = vld [vmem:[#allocation5 + $0xf0] sm:$0xff]  ;;  %v715_v26 = vld [vmem:[#allocation5 + $0xf8] sm:$0xff]  ;;  %p1697_p7 = pneg %p1696_p4 }
  0x98   : > { %492 = vperm.xlu1 %1567, %v487_v22   ;;  %v703_v22 = vld [vmem:[#allocation5 + $0x98] sm:$0xff]  ;;  %v1397_v53 = vpack.c.bf16 %v713_v51, %v712_v50  ;;  %p1703_p5 = por %p1702_p11, %p1701_p8 }
  0x99   : > { %1360 = vmatpush1.bf16.msra.mxu0 %v1359_v47  ;;  %v1377_v24 = vpack.c.bf16 %v703_v22, %v702_v21  ;;  %v1393_v47 = vpack.c.bf16 %v711_v45, %v710_v44  ;;  %v696_v22 = vld [vmem:[#allocation5 + $0x60] sm:$0xff] }
  0x9a   : > { %406 = vperm.xlu0 %1564, %v2030_v30   ;;  %1362 = vmatprep.subr.bf16.mxu0 %v1361_v49  ;;  %v695_v49 = vld [vmem:[#allocation5 + $0x58] sm:$0xff]  ;;  %p1704_p0 = pnand %p1703_p5, %p1697_p7 }
  0x9c   : > { %1568 = vset.pattern.permute.xlu1 %v1780_v12 }
  0x9d   : > { %423 = vperm.xlu1 %1568, %v416_v32   ;;  %1364 = vmatpush1.bf16.msra.mxu0 %v1363_v56  ;;  %v706_v32 = vld [vmem:[#allocation5 + $0xb0] sm:$0xff]  ;;  %v397_v56 = vlaneseq }
  0x9e   : > { %409 = vperm.xlu0 %1564, %v2035_v38   ;;  %1366 = vmatprep.subr.bf16.mxu0 %v1365_v58  ;;  %v1385_v35 = vpack.c.bf16 %v707_v33, %v706_v32  ;;  %v708_v38 = vld [vmem:[#allocation5 + $0xc0] sm:$0xff] }
  0x9f   : > { %v1389_v41 = vpack.c.bf16 %v709_v39, %v708_v38 }
  0xa1   : > { %1569 = vset.pattern.permute.xlu1 %v1783_v48 }
  0xa2   : > { %516 = vperm.xlu1 %1569, %v511_v43   ;;  %1576 = vset.pattern.permute.xlu0 %v1779_v1  ;;  %v1367_v1 = vpack.c.bf16 %v569_v60, %v567_v59  ;;  %v693_v43 = vld [vmem:[#allocation5 + $0x48] sm:$0xff]  ;;  %v2064_v60 = vand.u32 127, %v397_v56 }
  0xa3   : > { %447 = vperm.xlu0 %1576, %v440_v46   ;;  %v1391_v46 = vpack.c.bf16 %v693_v43, %v692_v42 }
  0xa4   : > { %1368 = vmatpush1.bf16.msra.mxu0 %v1367_v1 }
  0xa5   : > { %1370 = vmatprep.subr.bf16.mxu0 %v1369_v2 }
  0xa6   : > { %1570 = vset.pattern.permute.xlu1 %v1781_v18 }
  0xa7   : > { %471 = vperm.xlu1 %1570, %v464_v54   ;;  %450 = vperm.xlu0 %1576, %v441_v55  }
  0xa8   : > { %1372 = vmatpush1.bf16.msra.mxu0 %v1371_v7 }
  0xab   : > { %1571 = vset.pattern.permute.xlu1 %v1782_v29  ;;  %453 = vperm.xlu0 %1576, %v442_v63  }
  0xac   : > { %495 = vperm.xlu1 %1571, %v488_v0  }
  0xaf   : > { %1581 = vset.pattern.permute.xlu0 %v1783_v48 }
  0xb0   : > { %1572 = vset.pattern.permute.xlu1 %v1780_v12  ;;  %525 = vperm.xlu0 %1581, %v514_v5  }
  0xb1   : > { %426 = vperm.xlu1 %1572, %v417_v6  }
  0xb5   : > { %1573 = vset.pattern.permute.xlu1 %v1783_v48 }
  0xb6   : > { %519 = vperm.xlu1 %1573, %v512_v8  }
  0xba   : > { %1574 = vset.pattern.permute.xlu1 %v1781_v18 }
  0xbb   : > { %474 = vperm.xlu1 %1574, %v465_v9  }
  0xbf   : > { %1575 = vset.pattern.permute.xlu1 %v1782_v29 }
  0xc0   : > { %498 = vperm.xlu1 %1575, %v489_v10  }
  0xc4   : > { %1577 = vset.pattern.permute.xlu1 %v1780_v12  ;;  %v685_v12 = vld [vmem:[#allocation5 + $0x8] sm:$0xff] }
  0xc5   : > { %429 = vperm.xlu1 %1577, %v418_v11   ;;  %v1375_v23 = vpack.c.bf16 %v685_v12, %v684_v19 }
  0xc7   : > { %1376 = vmatpush3.bf16.msra.mxu1 %v1375_v23  ;;  %v697_v23 = vld [vmem:[#allocation5 + $0x68] sm:$0xff] }
  0xc8   : > { %1378 = vmatprep.subr.bf16.mxu1 %v1377_v24  ;;  %v1399_v24 = vpack.c.bf16 %v697_v23, %v696_v22  ;;  %v925_v22 = vld [vmem:[#allocation8 + $0x8] sm:$0xff]  ;;  %v926_v23 = vld [vmem:[#allocation8 + $0x10] sm:$0xff] }
  0xc9   : > { %1578 = vset.pattern.permute.xlu1 %v1783_v48  ;;  %v694_v48 = vld [vmem:[#allocation5 + $0x50] sm:$0xff] }
  0xca   : > { %522 = vperm.xlu1 %1578, %v513_v13   ;;  %v1395_v52 = vpack.c.bf16 %v695_v49, %v694_v48 }
  0xcb   : > { %1380 = vmatpush3.bf16.msra.mxu1 %v1379_v28  ;;  %v699_v28 = vld [vmem:[#allocation5 + $0x78] sm:$0xff] }
  0xce   : > { %1579 = vset.pattern.permute.xlu1 %v1781_v18  ;;  %v705_v18 = vld [vmem:[#allocation5 + $0xa8] sm:$0xff] }
  0xcf   : > { %477 = vperm.xlu1 %1579, %v466_v14   ;;  %v1381_v30 = vpack.c.bf16 %v705_v18, %v704_v27  ;;  %v1401_v27 = vpack.c.bf16 %v715_v26, %v714_v25  ;;  %v698_v18 = vld [vmem:[#allocation5 + $0x70] sm:$0xff]  ;;  %v927_v25 = vld [vmem:[#allocation8 + $0x18] sm:$0xff] }
  0xd0   : > { %v1441_v26 = vpack.c.bf16 %v927_v25, %v926_v23 }
  0xd1   : > { %1382 = vmatprep.subr.bf16.mxu1 %v1381_v30  ;;  %v1403_v30 = vpack.c.bf16 %v699_v28, %v698_v18  ;;  %v929_v18 = vld [vmem:[#allocation8 + $0x28] sm:$0xff] }
  0xd3   : > { %1580 = vset.pattern.permute.xlu1 %v1782_v29  ;;  %v688_v29 = vld [vmem:[#allocation5 + $0x20] sm:$0xff] }
  0xd4   : > { %501 = vperm.xlu1 %1580, %v490_v15   ;;  %v1383_v34 = vpack.c.bf16 %v689_v31, %v688_v29  ;;  %v812_v29 = vld [vmem:[#allocation7] sm:$0xff]  ;;  %v813_v31 = vld [vmem:[#allocation7 + $0x8] sm:$0xff] }
  0xd5   : > { %v1405_v32 = vpack.c.bf16 %v813_v31, %v812_v29  ;;  %v931_v29 = vld [vmem:[#allocation8 + $0x38] sm:$0xff] }
  0xd6   : > { %1384 = vmatpush3.bf16.msra.mxu1 %v1383_v34  ;;  %v575_v34 = vld [vmem:[%s2162_s2] sm:$0x3] }
  0xd7   : > { %1386 = vmatprep.subr.bf16.mxu1 %v1385_v35  ;;  %1406 = vmatprep.subr.bf16.mxu0 %v1405_v32 }
  0xda   : > { %1388 = vmatpush3.bf16.msra.mxu1 %v1387_v40 }
  0xdb   : > { %1390 = vmatprep.subr.bf16.mxu1 %v1389_v41 }
  0xde   : > { %1392 = vmatpush3.bf16.msra.mxu1 %v1391_v46 }
  0xdf   : > { %1394 = vmatprep.subr.bf16.mxu1 %v1393_v47 }
  0xe2   : > { %1396 = vmatpush3.bf16.msra.mxu1 %v1395_v52 }
  0xe3   : > { %1398 = vmatprep.subr.bf16.mxu1 %v1397_v53 }
  0xe6   : > { %1400 = vmatpush3.bf16.msra.mxu1 %v1399_v24 }
  0xe7   : > { %1402 = vmatprep.subr.bf16.mxu1 %v1401_v27  ;;  %v928_v27 = vld [vmem:[#allocation8 + $0x20] sm:$0xff] }
  0xe8   : > { %v1445_v28 = vpack.c.bf16 %v929_v18, %v928_v27 }
  0xea   : > { %1404 = vmatpush3.bf16.msra.mxu1 %v1403_v30  ;;  %v930_v30 = vld [vmem:[#allocation8 + $0x30] sm:$0xff] }
  0xeb   : > { %v1449_v31 = vpack.c.bf16 %v931_v29, %v930_v30 }
 0x10b   : > { %v401_v55 = vpop.permute.xlu0 %400 }
 0x10c   : > { %vm411_vm0 = vcmp.eq.s32.totalorder %v2064_v60, %v401_v55 }
 0x10d   : > { %v445_v54 = vpop.permute.xlu1 %444 }
 0x10e   : > { %vm455_vm3 = vcmp.eq.s32.totalorder %v2064_v60, %v445_v54 }
 0x110   : > { %v421_v59 = vpop.permute.xlu0 %420 }
 0x111   : > { %vm431_vm1 = vcmp.eq.s32.totalorder %v2064_v60, %v421_v59 }
 0x112   : > { %v469_v58 = vpop.permute.xlu1 %468  ;;  %vm435_vm2 = vmor %vm411_vm0, %vm431_vm1 }
 0x113   : > { %vm459_vm4 = vmor %vm435_vm2, %vm455_vm3  ;;  %vm479_vm5 = vcmp.eq.s32.totalorder %v2064_v60, %v469_v58 }
 0x114   : > { %vm483_vm7 = vmor %vm459_vm4, %vm479_vm5 }
 0x115   : > { %v404_v62 = vpop.permute.xlu0 %403 }
 0x116   : > { %vm412_vm11 = vcmp.eq.s32.totalorder %v2064_v60, %v404_v62 }
 0x117   : > { %v493_v61 = vpop.permute.xlu1 %492 }
 0x118   : > { %vm503_vm6 = vcmp.eq.s32.totalorder %v2064_v60, %v493_v61 }
 0x119   : > { %vm507_vm8 = vmor %vm483_vm7, %vm503_vm6  ;;  %v407_v1 = vpop.permute.xlu0 %406 }
 0x11a   : > { %vm413_vm6 = vcmp.eq.s32.totalorder %v2064_v60, %v407_v1 }
 0x11c   : > { %v424_v63 = vpop.permute.xlu1 %423 }
 0x11d   : > { %v410_v4 = vpop.permute.xlu0 %409  ;;  %vm432_vm12 = vcmp.eq.s32.totalorder %v2064_v60, %v424_v63  ;;  %v814_v63 = vld [vmem:[#allocation7 + $0x10] sm:$0xff] }
 0x11e   : > { %vm436_vm15 = vmor %vm412_vm11, %vm432_vm12 }
 0x121   : > { %v517_v0 = vpop.permute.xlu1 %516 }
 0x122   : > { %vm527_vm9 = vcmp.eq.s32.totalorder %v2064_v60, %v517_v0  ;;  %v448_v6 = vpop.permute.xlu0 %447  ;;  %v815_v0 = vld [vmem:[#allocation7 + $0x18] sm:$0xff] }
 0x123   : > { %vm531_vm10 = vmor %vm507_vm8, %vm527_vm9  ;;  %vm456_vm13 = vcmp.eq.s32.totalorder %v2064_v60, %v448_v6  ;;  %v1409_v1 = vpack.c.bf16 %v815_v0, %v814_v63  ;;  %v819_v6 = vld [vmem:[#allocation7 + $0x38] sm:$0xff] }
 0x124   : > { %v1168_v2 = vsel %vm531_vm10, 1.0, %v1784_v57  ;;  %vm460_vm1 = vmor %vm436_vm15, %vm456_vm13  ;;  %v939_v63 = vld [vmem:[#allocation8 + $0x78] sm:$0xff] }
 0x125   : > { %652 = vmatmul.mubr.f32.vlgmr.msra.gmra.mrb[0].mxu0 %v1168_v2  ;;  %v816_v2 = vld [vmem:[#allocation7 + $0x20] sm:$0xff] }
 0x126   : > { %v472_v3 = vpop.permute.xlu1 %471  ;;  %657 = vmatprep.mubr.f32.mxu0 %v1784_v57  ;;  %v451_v13 = vpop.permute.xlu0 %450  ;;  %1408 = vmatpush3.bf16.msra.mxu0 %v1405_v32  ;;  %v932_v32 = vld [vmem:[#allocation8 + $0x40] sm:$0xff] }
 0x127   : > { %vm480_vm14 = vcmp.eq.s32.totalorder %v2064_v60, %v472_v3  ;;  %vm457_vm9 = vcmp.eq.s32.totalorder %v2064_v60, %v451_v13  ;;  %1410 = vmatprep.subr.bf16.mxu0 %v1409_v1  ;;  %v817_v3 = vld [vmem:[#allocation7 + $0x28] sm:$0xff]  ;;  %v823_v13 = vld [vmem:[#allocation7 + $0x58] sm:$0xff] }
 0x128   : > { %vm484_vm2 = vmor %vm460_vm1, %vm480_vm14 }
 0x12a   : > { %v454_v16 = vpop.permute.xlu0 %453  ;;  %1412 = vmatpush3.bf16.msra.mxu0 %v1409_v1  ;;  %v1173_v1 = vld [vmem:[%s2166_s6] ss:$0 sm:$0xff] }
 0x12b   : > { %v496_v5 = vpop.permute.xlu1 %495 }
 0x12c   : > { %vm504_vm0 = vcmp.eq.s32.totalorder %v2064_v60, %v496_v5  ;;  %v818_v5 = vld [vmem:[#allocation7 + $0x30] sm:$0xff] }
 0x12d   : > { %vm508_vm3 = vmor %vm484_vm2, %vm504_vm0  ;;  %vm414_vm2 = vcmp.eq.s32.totalorder %v2064_v60, %v410_v4  ;;  %v1413_v4 = vpack.c.bf16 %v817_v3, %v816_v2 }
 0x12f   : > { %v526_v20 = vpop.permute.xlu0 %525  ;;  %1414 = vmatprep.subr.bf16.mxu0 %v1413_v4 }
 0x130   : > { %v427_v7 = vpop.permute.xlu1 %426  ;;  %1416 = vmatpush3.bf16.msra.mxu0 %v1413_v4 }
 0x131   : > { %vm433_vm7 = vcmp.eq.s32.totalorder %v2064_v60, %v427_v7  ;;  %v1417_v7 = vpack.c.bf16 %v819_v6, %v818_v5 }
 0x132   : > { %vm437_vm8 = vmor %vm413_vm6, %vm433_vm7  ;;  %vm530_vm7 = vcmp.eq.s32.totalorder %v2064_v60, %v526_v20  ;;  %v827_v20 = vld [vmem:[#allocation7 + $0x78] sm:$0xff] }
 0x133   : > { %vm461_vm12 = vmor %vm437_vm8, %vm457_vm9  ;;  %1418 = vmatprep.subr.bf16.mxu0 %v1417_v7 }
 0x134   : > { %1420 = vmatpush3.bf16.msra.mxu0 %v1417_v7 }
 0x135   : > { %v520_v8 = vpop.permute.xlu1 %519 }
 0x136   : > { %vm528_vm4 = vcmp.eq.s32.totalorder %v2064_v60, %v520_v8  ;;  %v820_v8 = vld [vmem:[#allocation7 + $0x40] sm:$0xff] }
 0x137   : > { %vm532_vm5 = vmor %vm508_vm3, %vm528_vm4  ;;  %vm458_vm4 = vcmp.eq.s32.totalorder %v2064_v60, %v454_v16  ;;  %v825_v16 = vld [vmem:[#allocation7 + $0x68] sm:$0xff] }
 0x138   : > { %v1169_v9 = vsel %vm532_vm5, 1.0, %v1784_v57 }
 0x139   : > { %658 = vmatmul.mubr.f32.gmra.mrb[2].mxu0 %v1169_v9  ;;  %v821_v9 = vld [vmem:[#allocation7 + $0x48] sm:$0xff] }
 0x13a   : > { %v475_v10 = vpop.permute.xlu1 %474  ;;  %663 = vmatprep.mubr.f32.mxu0 %v1784_v57 }
 0x13b   : > { %vm481_vm10 = vcmp.eq.s32.totalorder %v2064_v60, %v475_v10  ;;  %v822_v10 = vld [vmem:[#allocation7 + $0x50] sm:$0xff] }
 0x13c   : > { %vm485_vm13 = vmor %vm461_vm12, %vm481_vm10 }
 0x13f   : > { %v499_v11 = vpop.permute.xlu1 %498 }
 0x140   : > { %vm505_vm11 = vcmp.eq.s32.totalorder %v2064_v60, %v499_v11  ;;  %v1421_v11 = vpack.c.bf16 %v821_v9, %v820_v8 }
 0x141   : > { %vm509_vm14 = vmor %vm485_vm13, %vm505_vm11 }
 0x142   : > { %1422 = vmatprep.subr.bf16.mxu0 %v1421_v11 }
 0x143   : > { %1424 = vmatpush3.bf16.msra.mxu0 %v1421_v11 }
 0x144   : > { %v430_v14 = vpop.permute.xlu1 %429 }
 0x145   : > { %vm434_vm1 = vcmp.eq.s32.totalorder %v2064_v60, %v430_v14  ;;  %v1425_v14 = vpack.c.bf16 %v823_v13, %v822_v10 }
 0x146   : > { %vm438_vm3 = vmor %vm414_vm2, %vm434_vm1 }
 0x147   : > { %vm462_vm6 = vmor %vm438_vm3, %vm458_vm4  ;;  %1426 = vmatprep.subr.bf16.mxu0 %v1425_v14 }
 0x148   : > { %1428 = vmatpush3.bf16.msra.mxu0 %v1425_v14 }
 0x149   : > { %v523_v15 = vpop.permute.xlu1 %522 }
 0x14a   : > { %vm529_vm15 = vcmp.eq.s32.totalorder %v2064_v60, %v523_v15  ;;  %v824_v15 = vld [vmem:[#allocation7 + $0x60] sm:$0xff] }
 0x14b   : > { %vm533_vm0 = vmor %vm509_vm14, %vm529_vm15 }
 0x14c   : > { %v1170_v17 = vsel %vm533_vm0, 1.0, %v1784_v57 }
 0x14d   : > { %664 = vmatmul.mubr.f32.gmra.mrb[4].mxu0 %v1170_v17  ;;  %v1429_v17 = vpack.c.bf16 %v825_v16, %v824_v15  ;;  %v1174_v15 = vld [vmem:[%s2168_s8] ss:$0 sm:$0xff] }
 0x14e   : > { %v478_v19 = vpop.permute.xlu1 %477  ;;  %669 = vmatprep.mubr.f32.mxu0 %v1784_v57 }
 0x14f   : > { %vm482_vm5 = vcmp.eq.s32.totalorder %v2064_v60, %v478_v19  ;;  %1430 = vmatprep.subr.bf16.mxu0 %v1429_v17  ;;  %v826_v19 = vld [vmem:[#allocation7 + $0x70] sm:$0xff] }
 0x150   : > { %vm486_vm8 = vmor %vm462_vm6, %vm482_vm5  ;;  %1432 = vmatpush3.bf16.msra.mxu0 %v1429_v17 }
 0x153   : > { %v502_v12 = vpop.permute.xlu1 %501 }
 0x154   : > { %vm506_vm9 = vcmp.eq.s32.totalorder %v2064_v60, %v502_v12  ;;  %v1433_v12 = vpack.c.bf16 %v827_v20, %v826_v19 }
 0x155   : > { %vm510_vm10 = vmor %vm486_vm8, %vm506_vm9 }
 0x156   : > { %vm534_vm11 = vmor %vm510_vm10, %vm530_vm7  ;;  %1434 = vmatprep.subr.bf16.mxu0 %v1433_v12 }
 0x157   : > { %v1171_v21 = vsel %vm534_vm11, 1.0, %v1784_v57  ;;  %v578_v57 = vshrl.u32 %v397_v56, 7  ;;  %1436 = vmatpush3.bf16.msra.mxu0 %v1433_v12 }
 0x158   : > { %670 = vmatmul.mubr.f32.gmra.mrb[6].mxu0 %v1171_v21  ;;  %v924_v21 = vld [vmem:[#allocation8] sm:$0xff] }
 0x159   : > { %v579_v33 = vsub.s32 0, %v578_v57  ;;  %v583_v35 = vsub.s32 1, %v578_v57  ;;  %v1437_v24 = vpack.c.bf16 %v925_v22, %v924_v21  ;;  %v933_v57 = vld [vmem:[#allocation8 + $0x48] sm:$0xff] }
 0x15b   : > { %v580_v36 = vrot.slane %v575_v34, %v579_v33  ;;  %v584_v37 = vrot.slane %v575_v34, %v583_v35  ;;  %1438 = vmatprep.subr.bf16.mxu1 %v1437_v24  ;;  %v1453_v33 = vpack.c.bf16 %v933_v57, %v932_v32  ;;  %v934_v34 = vld [vmem:[#allocation8 + $0x50] sm:$0xff]  ;;  %v935_v35 = vld [vmem:[#allocation8 + $0x58] sm:$0xff] }
 0x1f8   : > { %v653_v38 = vpop.f32.mrb[0].mxu0 }
 0x1f9   : > { %v654_v39 = vadd.f32 %v653_v38, %v580_v36  ;;  %v655_v40 = vpop.f32.mrb[1].mxu0  ;;  %v937_v38 = vld [vmem:[#allocation8 + $0x68] sm:$0xff] }
 0x1fa   : > { %v656_v41 = vadd.f32 %v655_v40, %v584_v37 }
 0x1fb   : > { %v676_v43 = vmax.f32 %v654_v39, 0.0 }
 0x1fc   : > { %v677_v42 = vmax.f32 %v656_v41, 0.0  ;;  %v1172_v41 = vld [vmem:[%s2164_s4] ss:$0 sm:$0xff] }
 0x1fe   : > { %787 = vmatprep.mubr.f32.mxu1 %v677_v42 }
 0x1ff   : > { %788 = vmatmul.mubr.f32.vlgmr.msra.gmra.mrb[0].mxu1 %v676_v43 }
 0x200   : > { %1440 = vmatpush3.bf16.msra.mxu1 %v1437_v24 }
 0x201   : > { %1442 = vmatprep.subr.bf16.mxu1 %v1441_v26 }
 0x204   : > { %1444 = vmatpush3.bf16.msra.mxu1 %v1441_v26 }
 0x205   : > { %1446 = vmatprep.subr.bf16.mxu1 %v1445_v28 }
 0x208   : > { %1448 = vmatpush3.bf16.msra.mxu1 %v1445_v28 }
 0x209   : > { %1450 = vmatprep.subr.bf16.mxu1 %v1449_v31 }
 0x20c   : > { %v659_v44 = vpop.f32.mrb[2].mxu0  ;;  %1452 = vmatpush3.bf16.msra.mxu1 %v1449_v31 }
 0x20d   : > { %v660_v45 = vadd.f32 %v659_v44, %v580_v36  ;;  %v661_v46 = vpop.f32.mrb[3].mxu0  ;;  %1454 = vmatprep.subr.bf16.mxu1 %v1453_v33 }
 0x20e   : > { %v662_v47 = vadd.f32 %v661_v46, %v584_v37 }
 0x20f   : > { %v678_v49 = vmax.f32 %v660_v45, 0.0 }
 0x210   : > { %v679_v48 = vmax.f32 %v662_v47, 0.0  ;;  %1456 = vmatpush3.bf16.msra.mxu1 %v1453_v33 }
 0x212   : > { %792 = vmatprep.mubr.f32.mxu1 %v679_v48 }
 0x213   : > { %793 = vmatmul.mubr.f32.gmra.mrb[2].mxu1 %v678_v49 }
 0x220   : > { %v665_v50 = vpop.f32.mrb[4].mxu0 }
 0x221   : > { %v666_v51 = vadd.f32 %v665_v50, %v580_v36  ;;  %v667_v52 = vpop.f32.mrb[5].mxu0 }
 0x222   : > { %v668_v53 = vadd.f32 %v667_v52, %v584_v37 }
 0x223   : > { %v680_v55 = vmax.f32 %v666_v51, 0.0 }
 0x224   : > { %v681_v54 = vmax.f32 %v668_v53, 0.0 }
 0x226   : > { %797 = vmatprep.mubr.f32.mxu1 %v681_v54 }
 0x227   : > { %798 = vmatmul.mubr.f32.gmra.mrb[4].mxu1 %v680_v55 }
 0x22b   : > { %v671_v56 = vpop.f32.mrb[6].mxu0 }
 0x22c   : > { %v672_v58 = vadd.f32 %v671_v56, %v580_v36  ;;  %v673_v59 = vpop.f32.mrb[7].mxu0  ;;  %v1457_v36 = vpack.c.bf16 %v935_v35, %v934_v34 }
 0x22d   : > { %v674_v60 = vadd.f32 %v673_v59, %v584_v37  ;;  %v936_v37 = vld [vmem:[#allocation8 + $0x60] sm:$0xff] }
 0x22e   : > { %v682_v62 = vmax.f32 %v672_v58, 0.0  ;;  %1458 = vmatprep.subr.bf16.mxu1 %v1457_v36  ;;  %v1461_v39 = vpack.c.bf16 %v937_v38, %v936_v37 }
 0x22f   : > { %v683_v61 = vmax.f32 %v674_v60, 0.0  ;;  %1460 = vmatpush3.bf16.msra.mxu1 %v1457_v36 }
 0x230   : > { %1462 = vmatprep.subr.bf16.mxu1 %v1461_v39 }
 0x231   : > { %802 = vmatprep.mubr.f32.mxu1 %v683_v61 }
 0x232   : > { %803 = vmatmul.mubr.f32.gmra.mrb[6].mxu1 %v682_v62  ;;  %v938_v62 = vld [vmem:[#allocation8 + $0x70] sm:$0xff] }
 0x233   : > { %1464 = vmatpush3.bf16.msra.mxu1 %v1461_v39  ;;  %v1465_v0 = vpack.c.bf16 %v939_v63, %v938_v62 }
 0x235   : > { %1466 = vmatprep.subr.bf16.mxu1 %v1465_v0 }
 0x237   : > { %1468 = vmatpush3.bf16.msra.mxu1 %v1465_v0 }
 0x2d2   : > { %v1213_v40 = vpop.f32.mrb[0].mxu1 }
 0x2d3   : > { %v1214_v42 = vpop.f32.mrb[1].mxu1 }
 0x2d4   : > { %v1215_v43 = vadd.f32 %v1214_v42, %v1213_v40 }
 0x2d6   : > { %v790_v44 = vadd.f32 %v1215_v43, %v1172_v41 }
 0x2d8   : > { %v808_v45 = vmax.f32 %v790_v44, 0.0 }
 0x2da   : > { %1297 = vmatprep.mubr.f32.mxu0 %v808_v45 }
 0x2e6   : > { %v1216_v46 = vpop.f32.mrb[2].mxu1 }
 0x2e7   : > { %v1217_v47 = vpop.f32.mrb[3].mxu1 }
 0x2e8   : > { %v1218_v48 = vadd.f32 %v1217_v47, %v1216_v46 }
 0x2ea   : > { %v795_v49 = vadd.f32 %v1218_v48, %v1172_v41 }
 0x2ec   : > { %v809_v50 = vmax.f32 %v795_v49, 0.0 }
 0x2ee   : > { %1298 = vmatmul.mubr.f32.vlgmr.msra.gmra.mrb[8].mxu0 %v809_v50 }
 0x2fa   : > { %v1219_v51 = vpop.f32.mrb[4].mxu1 }
 0x2fb   : > { %v1220_v52 = vpop.f32.mrb[5].mxu1 }
 0x2fc   : > { %v1221_v53 = vadd.f32 %v1220_v52, %v1219_v51 }
 0x2fe   : > { %v800_v54 = vadd.f32 %v1221_v53, %v1172_v41 }
 0x300   : > { %v810_v55 = vmax.f32 %v800_v54, 0.0 }
 0x302   : > { %1300 = vmatprep.mubr.f32.mxu0 %v810_v55 }
 0x305   : > { %v1222_v56 = vpop.f32.mrb[6].mxu1 }
 0x306   : > { %v1223_v58 = vpop.f32.mrb[7].mxu1 }
 0x307   : > { %v1224_v59 = vadd.f32 %v1223_v58, %v1222_v56 }
 0x309   : > { %v805_v60 = vadd.f32 %v1224_v59, %v1172_v41 }
 0x30b   : > { %v811_v61 = vmax.f32 %v805_v60, 0.0 }
 0x30d   : > { %1301 = vmatmul.mubr.f32.gmra.mrb[10].mxu0 %v811_v61 }
 0x3c1   : > { %v1299_v2 = vpop.f32.mrb[8].mxu0 }
 0x3c2   : > { %v907_v3 = vadd.f32 %v1299_v2, %v1173_v1  ;;  %v901_v4 = vpop.f32.mrb[9].mxu0 }
 0x3c3   : > { %v902_v5 = vadd.f32 %v1173_v1, %v901_v4 }
 0x3c4   : > { %v921_v7 = vmax.f32 %v907_v3, 0.0 }
 0x3c5   : > { %v920_v6 = vmax.f32 %v902_v5, 0.0 }
 0x3c7   : > { %1335 = vmatprep.mubr.f32.mxu1 %v920_v6 }
 0x3c8   : > { %1336 = vmatmul.mubr.f32.vlgmr.msra.gmra.mrb[8].mxu1 %v921_v7 }
 0x3e0   : > { %v1302_v8 = vpop.f32.mrb[10].mxu0 }
 0x3e1   : > { %v917_v9 = vadd.f32 %v1302_v8, %v1173_v1  ;;  %v911_v10 = vpop.f32.mrb[11].mxu0 }
 0x3e2   : > { %v912_v11 = vadd.f32 %v1173_v1, %v911_v10 }
 0x3e3   : > { %v923_v14 = vmax.f32 %v917_v9, 0.0 }
 0x3e4   : > { %v922_v13 = vmax.f32 %v912_v11, 0.0 }
 0x3e6   : > { %1338 = vmatprep.mubr.f32.mxu1 %v922_v13 }
 0x3e7   : > { %1339 = vmatmul.mubr.f32.gmra.mrb[10].mxu1 %v923_v14 }
 0x49b   : > { %v1337_v16 = vpop.f32.mrb[8].mxu1 }
 0x49c   : > { %v1019_v17 = vadd.f32 %v1337_v16, %v1174_v15  ;;  %v1013_v19 = vpop.f32.mrb[9].mxu1 }
 0x49d   : > { %v1014_v20 = vadd.f32 %v1174_v15, %v1013_v19 }
 0x49e   : > { %1033 = vst [vmem:[%s385_s11 + $0x8] sm:$0xff] %v1019_v17 }
 0x49f   : > { %1032 = vst [vmem:[%s385_s11] sm:$0xff] %v1014_v20 }
 0x4ba   : > { %v1340_v12 = vpop.f32.mrb[10].mxu1 }
 0x4bb   : > { %v1029_v21 = vadd.f32 %v1340_v12, %v1174_v15  ;;  %v1023_v22 = vpop.f32.mrb[11].mxu1 }
 0x4bc   : > { %v1024_v23 = vadd.f32 %v1174_v15, %v1023_v22 }
 0x4bd   : > { %1035 = vst [vmem:[%s385_s11 + $0x18] sm:$0xff] %v1029_v21 }
 0x4be   : > { %1034 = vst [vmem:[%s385_s11 + $0x10] sm:$0xff] %v1024_v23 }
 0x4bf   : > { %1707 = shalt.err (!%p1704_p0)
}
 0x4c0   : > { %s1708_s29 = scalar_lea.hbm %s2117_s25, 512  ;;  %s1712_s23 = scalar_lea.hbm %s2169_s9, 1024 }
 0x4c1   : > { %p1709_p6 = scmp.ne.s32.totalorder %s2117_s25, %s1708_s29  ;;  %p1713_p13 = scmp.lt.u32.totalorder %s2117_s25, %s2169_s9 }
 0x4c2   : > { %p1714_p12 = scmp.lt.u32.totalorder %s1712_s23, %s1708_s29  ;;  %p1716_p2 = scmp.lt.u32.totalorder %s1708_s29, %s2117_s25 }
 0x4c3   : > { %p1710_p9 = pnand %p1709_p6, %p2201_p3 }
 0x4c4   : > { %p1715_p1 = por %p1714_p12, %p1713_p13 }
 0x4c5   : > { %p1711_p10 = pneg %p1710_p9 }
 0x4c6   : > { %p1717_p4 = por %p1716_p2, %p1715_p1 }
 0x4c8   : > { %p1718_p7 = pnand %p1717_p4, %p1711_p10 }
 0x4ca   : > { %1721 = shalt.err (!%p1718_p7)
}
 0x4cb   : > { %s1786_s16 = smov 128   ;;  %s1787_s11 = smov 8  }
 0x4cc   : > { %1485 = dma.vmem_to_hbm [thread:$0]  (%p2201_p3), %s2112_s15, 512, %s2117_s25, %s2119_s3, %s1786_s16, %s1786_s16, %s1787_s11  }
 0x4cd PF: > { %s2202_s21 = sld [smem:[#allocation18_spill]]  ;;  %p1512_p8 = scmp.ge.s32.totalorder %s1768_s12, 2 }
 0x4ce   : > { %s1065_s24 = sand.u32 1, %s1756_s30  }
 0x4cf   : > { %s1066_s17 = scalar_lea.sflag [#allocation4], %s1065_s24 }
 0x4d3   : > { %p2203_p11 = scmp.ne.s32.totalorder %s2202_s21, 0 }
 0x4d5   : > { %p1501_p5 = pnand %p1512_p8, %p2203_p11 }
 0x4d7   : > { %1751 = dma.done.wait (!%p1501_p5), %s1066_s17, 512  }
 0x4d8   : > { %1753 = vsyncadd (!%p1501_p5), %s1066_s17, 4294966784  ;;  %s2204_s12 = sld [smem:[#allocation16_spill]]  ;;  %s2205_s14 = sld [smem:[#allocation15_spill]] }
 0x4d9   : > { %s2206_s11 = sld [smem:[#allocation17_spill]]  ;;  %s2207_s30 = smov %s1760_s10 }
 0x4de   : > { %p22_p0 = scmp.ge.s32.totalorder %s2204_s12, 4   ;;  %s2208_s10 = smov %s2205_s14 }
 0x4e0   :  { %24 = sbr.rel (!%p22_p0) target bundleno = 8 (0x8), region = 108 }
 0x4e7   :  { %1071 = vsyncpa [#allocation3], 1 }
 0x4e8   :  { %1073 = vsyncpa [#allocation3 + $0x1], 1 }
 0x4e9   :  { %1074 = vsyncpa [#allocation6], 1 }
 0x4ea   :  { %1075 = vsyncpa [#allocation9], 1 }
 0x4eb   :  { %1076 = vsyncpa [#allocation4], 1 }
 0x4ec   :  { %1078 = vsyncpa [#allocation4 + $0x1], 1 }

</bundles_post_ra>
